<compile_context>
chip_gen: v7x
topology: tpu7x:2x2x1
jax: 0.10.0
libtpu: 0.0.40
codegen_flags: <defaults>
</compile_context>

<pallas_src>
import functools

import numpy as np
import jax
import jax.numpy as jnp
from jax.experimental import pallas as pl
from jax.experimental.pallas import tpu as pltpu

_HIGHEST = jax.lax.Precision.HIGHEST


def _round_up(a, b):
    return (a + b - 1) // b * b


# ------------------------------ kernels ------------------------------

def _pool_kernel(x_ref, at_ref, o_ref):
    """Fused adaptive-avg-pool for all bins: pooled_tile = x_tile @ A_all^T."""
    o_ref[...] = jnp.dot(x_ref[...], at_ref[...],
                         preferred_element_type=jnp.float32,
                         precision=_HIGHEST)


def _head_kernel(pooled_ref, w_ref, mask_ref, gamma_ref, beta_ref, bt_ref,
                 o_ref, *, N, C):
    """1x1 conv + BatchNorm2d(training stats, biased var) + ReLU + bilinear
    upsample for one chunk of the stacked (bin, reduction) output channels.

    pooled_ref : (NC_pad, S_pad) f32   adaptive-pooled x (all bins, resident)
    w_ref      : (TR, C)               stacked 1x1-conv weights (chunk)
    mask_ref   : (TR, S_pad)           0/1 mask of the columns owned by the bin
    gamma_ref  : (TR, 1), beta_ref: (TR, 1)
    bt_ref     : (S_pad, H*W)          stacked Kron(U, V)^T upsample matrix
    o_ref      : (N, TR, H*W)
    """
    eps = 1e-5
    mask = mask_ref[...]                                        # (TR, S_pad)
    cnt = jnp.maximum(jnp.sum(mask, axis=1, keepdims=True), 1.0) * float(N)
    w = w_ref[...]                                              # (TR, C)

    # ---- 1x1 conv as MXU matmul (per batch element; N is small) ----
    ys = []
    s1 = jnp.zeros_like(cnt)
    for n in range(N):
        p_n = pooled_ref[pl.ds(n * C, C), :]                    # (C, S_pad)
        y_n = jnp.dot(w, p_n, preferred_element_type=jnp.float32,
                      precision=_HIGHEST)                       # (TR, S_pad)
        ys.append(y_n)
        s1 = s1 + jnp.sum(y_n * mask, axis=1, keepdims=True)

    # ---- BatchNorm2d batch statistics (training mode, biased variance) ----
    mean = s1 / cnt                                             # (TR, 1)
    s2 = jnp.zeros_like(cnt)
    for n in range(N):
        d = (ys[n] - mean) * mask
        s2 = s2 + jnp.sum(d * d, axis=1, keepdims=True)
    var = s2 / cnt
    scale = gamma_ref[...] * jax.lax.rsqrt(var + eps)           # (TR, 1)
    shift = beta_ref[...] - mean * scale

    # ---- affine + ReLU + bilinear upsample (one matmul per n) ----
    bt = bt_ref[...]                                            # (S_pad, H*W)
    for n in range(N):
        z = jnp.maximum(ys[n] * scale + shift, 0.0) * mask      # (TR, S_pad)
        o_ref[n] = jnp.dot(z, bt, preferred_element_type=jnp.float32,
                           precision=_HIGHEST).astype(o_ref.dtype)


# --------------------------- host-side glue ---------------------------

def _adaptive_pool_matrix(in_size, out_size):
    """M such that (M @ v) reproduces torch AdaptiveAvgPool1d semantics."""
    m = np.zeros((out_size, in_size), np.float32)
    for i in range(out_size):
        start = (i * in_size) // out_size
        end = ((i + 1) * in_size + out_size - 1) // out_size
        m[i, start:end] = 1.0 / (end - start)
    return m


def _bilinear_matrix(out_size, in_size):
    """Linear-interp matrix (align_corners=True): out = M @ in."""
    m = np.zeros((out_size, in_size), np.float32)
    if in_size == 1:
        m[:, 0] = 1.0
        return m
    for i in range(out_size):
        s = i * (in_size - 1) / (out_size - 1) if out_size > 1 else 0.0
        i0 = min(int(np.floor(s)), in_size - 1)
        i1 = min(i0 + 1, in_size - 1)
        f = s - i0
        m[i, i0] += 1.0 - f
        m[i, i1] += f
    return m


def _build_constants(H, W, bins):
    """Stacked Kron pooling / upsampling matrices for all bins."""
    HW = H * W
    sizes = [b * b for b in bins]
    S = int(np.sum(sizes))
    S_pad = _round_up(S, 128)                 # lane-dense pooled layout
    a_rows, b_cols = [], []
    for b in bins:
        P = _adaptive_pool_matrix(H, b)       # (b, H)
        Q = _adaptive_pool_matrix(W, b)       # (b, W)
        a_rows.append(np.einsum('ih,jw->ijhw', P, Q).reshape(b * b, HW))
        U = _bilinear_matrix(H, b)            # (H, b)
        V = _bilinear_matrix(W, b)            # (W, b)
        b_cols.append(np.einsum('hi,wj->hwij', U, V).reshape(HW, b * b))
    AT = np.zeros((HW, S_pad), np.float32)
    AT[:, :S] = np.concatenate(a_rows, axis=0).T      # (HW, S_pad)
    BT = np.zeros((S_pad, HW), np.float32)
    BT[:S, :] = np.concatenate(b_cols, axis=1).T      # (S_pad, HW)
    offs = np.cumsum([0] + sizes)[:-1]
    return AT, BT, offs, sizes, S_pad


def ppm_forward(x, params, bins):
    N, C, H, W = x.shape
    HW = H * W
    R = params[0][0].shape[0]
    nb = len(bins)
    KR = nb * R                              # stacked output channels

    AT, BT, offs, sizes, S_pad = _build_constants(H, W, bins)

    # ---------------- kernel 1: pooled = x @ A_all^T ----------------
    NC = N * C
    TM = min(256, _round_up(NC, 8))          # row tile (second-minor, /8)
    NC_pad = _round_up(NC, TM)
    x2 = x.reshape(NC, HW).astype(jnp.float32)
    if NC_pad > NC:
        x2 = jnp.pad(x2, ((0, NC_pad - NC), (0, 0)))

    pooled = pl.pallas_call(
        _pool_kernel,
        out_shape=jax.ShapeDtypeStruct((NC_pad, S_pad), jnp.float32),
        grid=(NC_pad // TM,),
        in_specs=[pl.BlockSpec((TM, HW), lambda i: (i, 0)),      # x row tiles
                  pl.BlockSpec((HW, S_pad), lambda i: (0, 0))],  # A_all^T resident
        out_specs=pl.BlockSpec((TM, S_pad), lambda i: (i, 0)),
        compiler_params=pltpu.CompilerParams(
            dimension_semantics=("parallel",),
            vmem_limit_bytes=32 * 1024 * 1024),
    )(x2, jnp.asarray(AT))

    # -------- stacked per-bin conv / BN params + per-bin column mask --------
    TR = min(128, _round_up(KR, 8))          # output-channel tile
    KR_pad = _round_up(KR, TR)

    w_stack = jnp.concatenate([p[0] for p in params], axis=0).astype(jnp.float32)
    gamma_s = jnp.concatenate([p[1] for p in params]).reshape(KR, 1).astype(jnp.float32)
    beta_s = jnp.concatenate([p[2] for p in params]).reshape(KR, 1).astype(jnp.float32)
    if KR_pad > KR:
        pad = KR_pad - KR
        w_stack = jnp.pad(w_stack, ((0, pad), (0, 0)))
        gamma_s = jnp.pad(gamma_s, ((0, pad), (0, 0)))
        beta_s = jnp.pad(beta_s, ((0, pad), (0, 0)))

    mask = np.zeros((KR_pad, S_pad), np.float32)
    for k in range(nb):
        mask[k * R:(k + 1) * R, offs[k]:offs[k] + sizes[k]] = 1.0

    # -------- kernel 2: conv + BN + ReLU + bilinear upsample --------
    head = functools.partial(_head_kernel, N=N, C=C)
    up = pl.pallas_call(
        head,
        out_shape=jax.ShapeDtypeStruct((N, KR_pad, HW), x.dtype),
        grid=(KR_pad // TR,),
        in_specs=[
            pl.BlockSpec((NC_pad, S_pad), lambda j: (0, 0)),   # pooled (resident)
            pl.BlockSpec((TR, C), lambda j: (j, 0)),           # conv weight chunk
            pl.BlockSpec((TR, S_pad), lambda j: (j, 0)),       # bin mask chunk
            pl.BlockSpec((TR, 1), lambda j: (j, 0)),           # gamma chunk
            pl.BlockSpec((TR, 1), lambda j: (j, 0)),           # beta chunk
            pl.BlockSpec((S_pad, HW), lambda j: (0, 0)),       # upsample mat (resident)
        ],
        out_specs=pl.BlockSpec((N, TR, HW), lambda j: (0, j, 0)),
        compiler_params=pltpu.CompilerParams(
            dimension_semantics=("parallel",),
            vmem_limit_bytes=32 * 1024 * 1024),
    )(pooled, w_stack, jnp.asarray(mask), gamma_s, beta_s, jnp.asarray(BT))

    branches = up[:, :KR, :].reshape(N, KR, H, W)
    # torch.cat([x, *branches], dim=1): plain-XLA glue (x must be copied into
    # the output either way, so in-kernel concat would save no HBM traffic).
    return jnp.concatenate([x, branches.astype(x.dtype)], axis=1)


def ppm_reference(x, params, bins):
    """Pure-JAX reference with identical semantics, for verification."""
    N, C, H, W = x.shape
    eps = 1e-5
    outs = [x]
    for bin_size, (w, gamma, beta) in zip(bins, params):
        P = jnp.asarray(_adaptive_pool_matrix(H, bin_size))
        Q = jnp.asarray(_adaptive_pool_matrix(W, bin_size))
        U = jnp.asarray(_bilinear_matrix(H, bin_size))
        V = jnp.asarray(_bilinear_matrix(W, bin_size))
        R = w.shape[0]
        pooled = jnp.einsum('nchw,ih,jw->ncij', x, P, Q, precision=_HIGHEST)
        y = jnp.einsum('ncij,rc->nrij', pooled, w, precision=_HIGHEST)
        mean = y.mean(axis=(0, 2, 3), keepdims=True)
        var = ((y - mean) ** 2).mean(axis=(0, 2, 3), keepdims=True)
        yb = (gamma.reshape(1, R, 1, 1) * (y - mean) * jax.lax.rsqrt(var + eps)
              + beta.reshape(1, R, 1, 1))
        yb = jnp.maximum(yb, 0.0)
        outs.append(jnp.einsum('nrij,hi,wj->nrhw', yb, U, V, precision=_HIGHEST))
    return jnp.concatenate(outs, axis=1)


if __name__ == "__main__":
    key = jax.random.PRNGKey(0)
    N, C, H, W = 2, 8, 16, 16        # in_dim = 8
    bins = (1, 2, 3, 6)
    R = 2                            # reduction_dim

    kx, *kws = jax.random.split(key, 1 + len(bins))
    x = jax.random.normal(kx, (N, C, H, W), jnp.float32)

    params = []
    bound = 1.0 / np.sqrt(C)         # Conv2d(k=1, bias=False) fan_in init bound
    for kb in kws:
        w = jax.random.uniform(kb, (R, C), jnp.float32, -bound, bound)
        gamma = jnp.ones((R,), jnp.float32)    # BatchNorm2d default init
        beta = jnp.zeros((R,), jnp.float32)
        params.append((w, gamma, beta))

    out = jax.block_until_ready(ppm_forward(x, params, bins))
    ref = jax.block_until_ready(ppm_reference(x, params, bins))

    assert out.shape == (N, C + R * len(bins), H, W), out.shape
    np.testing.assert_allclose(np.asarray(out), np.asarray(ref),
                               rtol=1e-3, atol=1e-3)
    print("KERNEL_OK")
</pallas_src>

<mosaic_0001>
module attributes {stable_mosaic.version = 11 : i64} {
  func.func @_pool_kernel(%arg0: i32, %arg1: memref<16x256xf32, #tpu.memory_space<vmem>>, %arg2: memref<256x128xf32, #tpu.memory_space<vmem>>, %arg3: memref<16x128xf32, #tpu.memory_space<vmem>>) attributes {dimension_semantics = [#tpu.dimension_semantics<parallel>], iteration_bounds = array<i64: 1>, scalar_prefetch = 0 : i64, scratch_operands = 0 : i64, tpu.core_type = #tpu.core_type<tc>, window_params = [{transform_indices = @transform_0, window_bounds = array<i64: 16, 256>}, {pipeline_mode = #tpu.pipeline_mode<synchronous>, transform_indices = @transform_1, window_bounds = array<i64: 256, 128>}, {transform_indices = @transform_2, window_bounds = array<i64: 16, 128>}]} {
    %c0 = arith.constant 0 : index
    %c0_0 = arith.constant 0 : index
    %0 = vector.load %arg1[%c0, %c0_0] : memref<16x256xf32, #tpu.memory_space<vmem>>, vector<16x256xf32>
    %c0_1 = arith.constant 0 : index
    %c0_2 = arith.constant 0 : index
    %1 = vector.load %arg2[%c0_1, %c0_2] : memref<256x128xf32, #tpu.memory_space<vmem>>, vector<256x128xf32>
    %cst = arith.constant dense<0.000000e+00> : vector<16x128xf32>
    %2 = tpu.matmul %0, %1, %cst {dimension_numbers = #tpu.dot_dimension_numbers<[1], [0], [0], [1], [0, 0, 1, 1], [], []>, precision = #tpu.contract_precision<fp32>} : vector<16x256xf32>, vector<256x128xf32>, vector<16x128xf32> -> vector<16x128xf32>
    %c0_3 = arith.constant 0 : index
    %c0_4 = arith.constant 0 : index
    %3 = vector.load %arg3[%c0_3, %c0_4] : memref<16x128xf32, #tpu.memory_space<vmem>>, vector<16x128xf32>
    tpu.vector_store %arg3[%c0_3, %c0_4], %2 {strides = array<i32>} : memref<16x128xf32, #tpu.memory_space<vmem>>, vector<16x128xf32>,
    return
  }
  func.func @transform_0(%arg0: i32) -> (i32, i32) {
    %c0_i32 = arith.constant 0 : i32
    %c0_i32_0 = arith.constant 0 : i32
    return %arg0, %c0_i32 : i32, i32
  }
  func.func @transform_1(%arg0: i32) -> (i32, i32) {
    %c0_i32 = arith.constant 0 : i32
    %c0_i32_0 = arith.constant 0 : i32
    %c0_i32_1 = arith.constant 0 : i32
    return %c0_i32, %c0_i32_0 : i32, i32
  }
  func.func @transform_2(%arg0: i32) -> (i32, i32) {
    %c0_i32 = arith.constant 0 : i32
    %c0_i32_0 = arith.constant 0 : i32
    return %arg0, %c0_i32 : i32, i32
  }
}

</mosaic_0001>

<bundles_post_ra>
// kernel: tpu_custom_call.1
= control target key start
LH: loop header
LB: loop body
LE: loop exit
PB: predicated region body
PF: predicated region fallthrough
CT: control target
= control target key end

     0   :  { %7 = vsyncpa [#allocation3], 0  ;;  %s2017_s0 = inlined_call_operand.hbm [shape: f32[16,256], index: 0, kind: input, shape index: {}]   ;;  %s2018_s1 = inlined_call_operand.hbm [shape: f32[256,128], index: 1, kind: input, shape index: {}]   ;;  %s2019_s2 = inlined_call_operand.hbm [shape: f32[16,128], index: 2, kind: output, shape index: {}]  }
   0x1   :  { %8 = vsyncpa [#allocation6], 0 }
   0x2   :  { %9 = vsyncpa [#allocation4], 0  ;;  %s1513_s9 = smov [#allocation2]   ;;  %s1441_s13 = scalar_lea.hbm %s2017_s0, 512 }
   0x3   :  { %s15_s10 = sshll.u32 %s1513_s9, 4  ;;  %p1442_p0 = scmp.ne.s32.totalorder %s2017_s0, %s1441_s13  ;;  %s16_s10 = int_to_ptr.vmem [resolvable:$true] %s15_s10 }
   0x4   :  { %p1445_p1 = scmp.lt.u32.totalorder %s1441_s13, %s2017_s0 }
   0x6   :  { %p1447_p2 = pnand %p1445_p1, %p1442_p0 }
   0x8   :  { %1450 = shalt.err (!%p1447_p2)
}
   0x9   :  { %s1451_s18 = scalar_lea.vmem %s16_s10, 512  ;;  %p1456_p4 = scmp.lt.s32.totalorder %s16_s10, %s16_s10 }
   0xa   :  { %p1452_p3 = scmp.ne.s32.totalorder %s16_s10, %s1451_s18  ;;  %p1457_p5 = scmp.lt.s32.totalorder %s1451_s18, %s1451_s18 }
   0xc   :  { %p1458_p6 = por %p1457_p5, %p1456_p4 }
   0xe   :  { %p1459_p7 = pnand %p1458_p6, %p1452_p3 }
  0x10   :  { %1462 = shalt.err (!%p1459_p7)
}
  0x11   :  { %s1514_s19 = smov 256   ;;  %s1515_s20 = smov 16  }
  0x12   :  { %21 = dma.hbm_to_vmem [thread:$0]  %s2017_s0, 512, %s16_s10, [#allocation3], %s1514_s19, %s1514_s19, %s1515_s20  }
  0x13   :  { %s1516_s23 = smov [#allocation5]   ;;  %s1463_s27 = scalar_lea.hbm %s2018_s1, 4096 }
  0x14   :  { %s27_s24 = sshll.u32 %s1516_s23, 4  ;;  %p1464_p8 = scmp.ne.s32.totalorder %s2018_s1, %s1463_s27  ;;  %s28_s24 = int_to_ptr.vmem [resolvable:$true] %s27_s24 }
  0x15   :  { %p1467_p9 = scmp.lt.u32.totalorder %s1463_s27, %s2018_s1 }
  0x17   :  { %p1469_p10 = pnand %p1467_p9, %p1464_p8 }
  0x19   :  { %1472 = shalt.err (!%p1469_p10)
}
  0x1a   :  { %s1473_s4 = scalar_lea.vmem %s28_s24, 4096  ;;  %p1478_p12 = scmp.lt.s32.totalorder %s28_s24, %s28_s24 }
  0x1b   :  { %p1474_p11 = scmp.ne.s32.totalorder %s28_s24, %s1473_s4  ;;  %p1479_p13 = scmp.lt.s32.totalorder %s1473_s4, %s1473_s4 }
  0x1d   :  { %p1480_p0 = por %p1479_p13, %p1478_p12 }
  0x1f   :  { %p1481_p1 = pnand %p1480_p0, %p1474_p11 }
  0x21   :  { %1484 = shalt.err (!%p1481_p1)
}
  0x22   :  { %s1517_s0 = smov 128   ;;  %s1518_s5 = smov 8  }
  0x23   :  { %33 = dma.hbm_to_vmem [thread:$0]  %s2018_s1, 4096, %s28_s24, [#allocation6], %s1517_s0, %s1517_s0, %s1518_s5  }
  0x24   :  { %1507 = dma.done.wait [#allocation3], 512  }
  0x25   :  { %1508 = vsyncadd [#allocation3], 4294966784 }
  0x26   :  { %1509 = dma.done.wait [#allocation6], 4096  }
  0x27   :  { %1510 = vsyncadd [#allocation6], 4294963200  ;;  %v60_v0 = vld [vmem:[#allocation5 + $0x80] sm:$0xff]  ;;  %v61_v1 = vld [vmem:[#allocation5 + $0x88] sm:$0xff]  ;;  %s1519_s1 = smov [#allocation7]  }
  0x28   :  { %v44_v2 = vld [vmem:[#allocation5] sm:$0xff]  ;;  %v125_v3 = vand.u32 4294901760, %v60_v0  ;;  %v128_v4 = vand.u32 4294901760, %v61_v1  ;;  %v45_v5 = vld [vmem:[#allocation5 + $0x8] sm:$0xff]  ;;  %v62_v7 = vld [vmem:[#allocation5 + $0x90] sm:$0xff]  ;;  %s1001_s8 = sshll.u32 %s1519_s1, 4  ;;  %s1002_s8 = int_to_ptr.vmem [resolvable:$true] %s1001_s8 }
  0x29   :  { %v77_v6 = vand.u32 4294901760, %v44_v2  ;;  %v63_v8 = vld [vmem:[#allocation5 + $0x98] sm:$0xff]  ;;  %v80_v9 = vand.u32 4294901760, %v45_v5  ;;  %v131_v10 = vand.u32 4294901760, %v62_v7  ;;  %v46_v12 = vld [vmem:[#allocation5 + $0x10] sm:$0xff]  ;;  %v64_v18 = vld [vmem:[#allocation5 + $0xa0] sm:$0xff]  ;;  %p1490_p3 = scmp.lt.s32.totalorder %s1002_s8, %s1002_s8 }
  0x2a   :  { %v134_v11 = vand.u32 4294901760, %v63_v8  ;;  %v47_v13 = vld [vmem:[#allocation5 + $0x18] sm:$0xff]  ;;  %v1562_v14 = vpack.c.bf16 %v128_v4, %v125_v3  ;;  %v83_v16 = vand.u32 4294901760, %v46_v12  ;;  %v65_v19 = vld [vmem:[#allocation5 + $0xa8] sm:$0xff]  ;;  %v48_v23 = vld [vmem:[#allocation5 + $0x20] sm:$0xff]  ;;  %v137_v29 = vand.u32 4294901760, %v64_v18 }
  0x2b   :  { %v1564_v15 = vsub.f32 %v44_v2, %v77_v6  ;;  %v86_v17 = vand.u32 4294901760, %v47_v13  ;;  %v1566_v20 = vpack.c.bf16 %v80_v9, %v77_v6  ;;  %v1568_v21 = vsub.f32 %v45_v5, %v80_v9  ;;  %v49_v24 = vld [vmem:[#allocation5 + $0x28] sm:$0xff]  ;;  %v66_v37 = vld [vmem:[#allocation5 + $0xb0] sm:$0xff]  ;;  %v67_v42 = vld [vmem:[#allocation5 + $0xb8] sm:$0xff]  ;;  %s1485_s9 = scalar_lea.vmem %s1002_s8, 256 }
  0x2c   :  { %v1570_v22 = vpack.c.bf16 %v134_v11, %v131_v10  ;;  %1243 = vmatprep.subr.bf16.mxu0 %v1562_v14  ;;  %v1573_v25 = vsub.f32 %v62_v7, %v131_v10  ;;  %v1575_v26 = vsub.f32 %v63_v8, %v134_v11  ;;  %v1579_v28 = vsub.f32 %v46_v12, %v83_v16  ;;  %v50_v55 = vld [vmem:[#allocation5 + $0x30] sm:$0xff]  ;;  %v51_v56 = vld [vmem:[#allocation5 + $0x38] sm:$0xff]  ;;  %v68_v5 = vld [vmem:[#allocation5 + $0xc0] sm:$0xff]  ;;  %p1486_p2 = scmp.ne.s32.totalorder %s1002_s8, %s1485_s9  ;;  %p1491_p4 = scmp.lt.s32.totalorder %s1485_s9, %s1485_s9 }
  0x2d   :  { %v1577_v27 = vpack.c.bf16 %v86_v17, %v83_v16  ;;  %1245 = vmatpush3.bf16.msra.mxu0 %v1566_v20  ;;  %v140_v30 = vand.u32 4294901760, %v65_v19  ;;  %v1582_v31 = vsub.f32 %v60_v0, %v125_v3  ;;  %v1584_v32 = vsub.f32 %v61_v1, %v128_v4  ;;  %v69_v6 = vld [vmem:[#allocation5 + $0xc8] sm:$0xff]  ;;  %v52_v11 = vld [vmem:[#allocation5 + $0x40] sm:$0xff] }
  0x2e   :  { %1247 = vmatprep.subr.bf16.mxu0 %v1570_v22  ;;  %v89_v33 = vand.u32 4294901760, %v48_v23  ;;  %v92_v34 = vand.u32 4294901760, %v49_v24  ;;  %v2035_v35 = vand.u32 4294901760, %v1564_v15  ;;  %v2034_v36 = vand.u32 4294901760, %v1568_v21  ;;  %p1492_p5 = por %p1491_p4, %p1490_p3 }
  0x2f   :  { %v1589_v38 = vsub.f32 %v47_v13, %v86_v17  ;;  %v1591_v39 = vpack.c.bf16 %v140_v30, %v137_v29  ;;  %v1593_v40 = vsub.f32 %v64_v18, %v137_v29  ;;  %v2039_v41 = vand.u32 4294901760, %v1582_v31  ;;  %v53_v29 = vld [vmem:[#allocation5 + $0x48] sm:$0xff] }
  0x30   :  { %v1596_v43 = vsub.f32 %v65_v19, %v140_v30  ;;  %v2037_v44 = vand.u32 4294901760, %v1584_v32  ;;  %v1599_v45 = vpack.c.bf16 %v92_v34, %v89_v33  ;;  %v1601_v46 = vsub.f32 %v48_v23, %v89_v33  ;;  %p1493_p6 = pnand %p1492_p5, %p1486_p2 }
  0x31   :  { %1249 = vmatpush3.bf16.msra.mxu0 %v1577_v27  ;;  %v319_v47 = vsub.f32 %v1582_v31, %v2039_v41  ;;  %v207_v48 = vsub.f32 %v1564_v15, %v2035_v35  ;;  %v214_v49 = vsub.f32 %v1568_v21, %v2034_v36  ;;  %v143_v50 = vand.u32 4294901760, %v66_v37  ;;  %v41_v41 = vld [vmem:[#allocation2 + $0x8] sm:$0xff] }
  0x32   :  { %1251 = vmatprep.subr.bf16.mxu0 %v1591_v39  ;;  %v326_v51 = vsub.f32 %v1584_v32, %v2037_v44  ;;  %v146_v52 = vand.u32 4294901760, %v67_v42  ;;  %v2032_v53 = vand.u32 4294901760, %v1573_v25  ;;  %v2030_v54 = vand.u32 4294901760, %v1575_v26 }
  0x33   :  { %v320_v57 = vand.u32 4294901760, %v319_v47  ;;  %v1619_v58 = vsub.f32 %v49_v24, %v92_v34  ;;  %v208_v59 = vand.u32 4294901760, %v207_v48  ;;  %v215_v60 = vand.u32 4294901760, %v214_v49 }
  0x34   :  { %v327_v61 = vand.u32 4294901760, %v326_v51  ;;  %v1621_v62 = vpack.c.bf16 %v146_v52, %v143_v50  ;;  %v1623_v63 = vsub.f32 %v66_v37, %v143_v50  ;;  %v333_v0 = vsub.f32 %v1573_v25, %v2032_v53 }
  0x35   :  { %1253 = vmatpush3.bf16.msra.mxu0 %v1599_v45  ;;  %v1276_v1 = vpack.c.bf16 %v215_v60, %v208_v59  ;;  %v340_v2 = vsub.f32 %v1575_v26, %v2030_v54  ;;  %v95_v3 = vand.u32 4294901760, %v50_v55  ;;  %v98_v4 = vand.u32 4294901760, %v51_v56  ;;  %v71_v59 = vld [vmem:[#allocation5 + $0xd8] sm:$0xff] }
  0x36   :  { %v1274_v7 = vpack.c.bf16 %v327_v61, %v320_v57  ;;  %1255 = vmatprep.subr.bf16.mxu0 %v1621_v62  ;;  %v334_v8 = vand.u32 4294901760, %v333_v0  ;;  %v2029_v9 = vand.u32 4294901760, %v1579_v28  ;;  %v2027_v10 = vand.u32 4294901760, %v1589_v38  ;;  %v70_v57 = vld [vmem:[#allocation5 + $0xd0] sm:$0xff]  ;;  %v75_v54 = vld [vmem:[#allocation5 + $0xf8] sm:$0xff] }
  0x37   :  { %v1635_v12 = vsub.f32 %v67_v42, %v146_v52  ;;  %v341_v13 = vand.u32 4294901760, %v340_v2  ;;  %v1637_v16 = vpack.c.bf16 %v98_v4, %v95_v3  ;;  %v1639_v17 = vsub.f32 %v50_v55, %v95_v3 }
  0x38   :  { %1275 = vmatprep.subr.bf16.mxu1 %v1274_v7  ;;  %v221_v18 = vsub.f32 %v1579_v28, %v2029_v9  ;;  %v228_v19 = vsub.f32 %v1589_v38, %v2027_v10  ;;  %v149_v23 = vand.u32 4294901760, %v68_v5  ;;  %v152_v24 = vand.u32 4294901760, %v69_v6  ;;  %v74_v9 = vld [vmem:[#allocation5 + $0xf0] sm:$0xff] }
  0x39   :  { %1277 = vmatpush3.bf16.msra.mxu1 %v1276_v1  ;;  %v1278_v30 = vpack.c.bf16 %v341_v13, %v334_v8  ;;  %1257 = vmatpush3.bf16.msra.mxu0 %v1637_v16  ;;  %v2025_v33 = vand.u32 4294901760, %v1593_v40  ;;  %v2024_v34 = vand.u32 4294901760, %v1596_v43  ;;  %v101_v37 = vand.u32 4294901760, %v52_v11  ;;  %v54_v1 = vld [vmem:[#allocation5 + $0x50] sm:$0xff] }
  0x3a   :  { %v1650_v42 = vsub.f32 %v51_v56, %v98_v4  ;;  %v222_v47 = vand.u32 4294901760, %v221_v18  ;;  %v229_v48 = vand.u32 4294901760, %v228_v19  ;;  %v1652_v49 = vpack.c.bf16 %v152_v24, %v149_v23  ;;  %v55_v18 = vld [vmem:[#allocation5 + $0x58] sm:$0xff] }
  0x3b   :  { %1279 = vmatprep.subr.bf16.mxu1 %v1278_v30  ;;  %v1654_v50 = vsub.f32 %v68_v5, %v149_v23  ;;  %v347_v51 = vsub.f32 %v1593_v40, %v2025_v33  ;;  %v354_v52 = vsub.f32 %v1596_v43, %v2024_v34  ;;  %v104_v55 = vand.u32 4294901760, %v53_v29 }
  0x3c   :  { %v1280_v56 = vpack.c.bf16 %v229_v48, %v222_v47  ;;  %1259 = vmatprep.subr.bf16.mxu0 %v1652_v49  ;;  %v1663_v60 = vsub.f32 %v69_v6, %v152_v24  ;;  %v2022_v61 = vand.u32 4294901760, %v1601_v46  ;;  %v2020_v0 = vand.u32 4294901760, %v1619_v58 }
  0x3d   :  { %v348_v2 = vand.u32 4294901760, %v347_v51  ;;  %v355_v3 = vand.u32 4294901760, %v354_v52  ;;  %v1667_v4 = vpack.c.bf16 %v104_v55, %v101_v37  ;;  %v1669_v5 = vsub.f32 %v52_v11, %v101_v37 }
  0x3e   :  { %1281 = vmatpush3.bf16.msra.mxu1 %v1280_v56  ;;  %v235_v7 = vsub.f32 %v1601_v46, %v2022_v61  ;;  %v242_v6 = vsub.f32 %v1619_v58, %v2020_v0  ;;  %v155_v8 = vand.u32 4294901760, %v70_v57  ;;  %v158_v13 = vand.u32 4294901760, %v71_v59  ;;  %v73_v0 = vld [vmem:[#allocation5 + $0xe8] sm:$0xff] }
  0x3f   :  { %v1282_v19 = vpack.c.bf16 %v355_v3, %v348_v2  ;;  %1261 = vmatpush3.bf16.msra.mxu0 %v1667_v4  ;;  %v2021_v23 = vand.u32 4294901760, %v1623_v63  ;;  %v2023_v11 = vand.u32 4294901760, %v1635_v12  ;;  %v107_v24 = vand.u32 4294901760, %v54_v1  ;;  %v72_v3 = vld [vmem:[#allocation5 + $0xe0] sm:$0xff] }
  0x40   :  { %v1680_v30 = vsub.f32 %v53_v29, %v104_v55  ;;  %v236_v37 = vand.u32 4294901760, %v235_v7  ;;  %v243_v47 = vand.u32 4294901760, %v242_v6  ;;  %v1682_v48 = vpack.c.bf16 %v158_v13, %v155_v8  ;;  %v56_v6 = vld [vmem:[#allocation5 + $0x60] sm:$0xff] }
  0x41   :  { %1283 = vmatprep.subr.bf16.mxu1 %v1282_v19  ;;  %v1684_v51 = vsub.f32 %v70_v57, %v155_v8  ;;  %v361_v52 = vsub.f32 %v1623_v63, %v2021_v23  ;;  %v368_v56 = vsub.f32 %v1635_v12, %v2023_v11  ;;  %v110_v2 = vand.u32 4294901760, %v55_v18  ;;  %v57_v11 = vld [vmem:[#allocation5 + $0x68] sm:$0xff] }
  0x42   :  { %2070 = vst [vmem:[#allocation11_spill] sm:$0xff] %v1682_v48  ;;  %v1284_v29 = vpack.c.bf16 %v243_v47, %v236_v37  ;;  %1263 = vmatprep.subr.bf16.mxu0 %v1682_v48  ;;  %v1693_v55 = vsub.f32 %v71_v59, %v158_v13  ;;  %v2026_v7 = vand.u32 4294901760, %v1639_v17  ;;  %v2028_v57 = vand.u32 4294901760, %v1650_v42 }
  0x43   :  { %v362_v8 = vand.u32 4294901760, %v361_v52  ;;  %v369_v19 = vand.u32 4294901760, %v368_v56  ;;  %v1697_v23 = vpack.c.bf16 %v110_v2, %v107_v24  ;;  %v1699_v61 = vsub.f32 %v54_v1, %v107_v24 }
  0x44   :  { %1285 = vmatpush3.bf16.msra.mxu1 %v1284_v29  ;;  %v249_v37 = vsub.f32 %v1639_v17, %v2026_v7  ;;  %v256_v59 = vsub.f32 %v1650_v42, %v2028_v57  ;;  %v161_v13 = vand.u32 4294901760, %v72_v3  ;;  %v164_v47 = vand.u32 4294901760, %v73_v0 }
  0x45   :  { %2071 = vst [vmem:[#allocation12_spill] sm:$0xff] %v1697_v23  ;;  %v1286_v34 = vpack.c.bf16 %v369_v19, %v362_v8  ;;  %1265 = vmatpush3.bf16.msra.mxu0 %v1697_v23  ;;  %v2031_v52 = vand.u32 4294901760, %v1654_v50  ;;  %v2033_v1 = vand.u32 4294901760, %v1663_v60  ;;  %v113_v24 = vand.u32 4294901760, %v56_v6  ;;  %v43_v23 = vld [vmem:[#allocation2 + $0x18] sm:$0xff] }
  0x46   :  { %v1710_v56 = vsub.f32 %v55_v18, %v110_v2  ;;  %v250_v29 = vand.u32 4294901760, %v249_v37  ;;  %v257_v33 = vand.u32 4294901760, %v256_v59  ;;  %v1712_v7 = vpack.c.bf16 %v164_v47, %v161_v13  ;;  %v58_v37 = vld [vmem:[#allocation5 + $0x70] sm:$0xff] }
  0x47   :  { %1287 = vmatprep.subr.bf16.mxu1 %v1286_v34  ;;  %v1714_v10 = vsub.f32 %v72_v3, %v161_v13  ;;  %v375_v8 = vsub.f32 %v1654_v50, %v2031_v52  ;;  %v382_v19 = vsub.f32 %v1663_v60, %v2033_v1  ;;  %v116_v57 = vand.u32 4294901760, %v57_v11  ;;  %v59_v1 = vld [vmem:[#allocation5 + $0x78] sm:$0xff] }
  0x48   :  { %2072 = vst [vmem:[#allocation13_spill] sm:$0xff] %v1712_v7  ;;  %v1288_v18 = vpack.c.bf16 %v257_v33, %v250_v29  ;;  %1267 = vmatprep.subr.bf16.mxu0 %v1712_v7  ;;  %v1723_v2 = vsub.f32 %v73_v0, %v164_v47  ;;  %v2036_v34 = vand.u32 4294901760, %v1669_v5  ;;  %v2038_v3 = vand.u32 4294901760, %v1680_v30 }
  0x49   :  { %v376_v59 = vand.u32 4294901760, %v375_v8  ;;  %v383_v13 = vand.u32 4294901760, %v382_v19  ;;  %v1727_v52 = vpack.c.bf16 %v116_v57, %v113_v24  ;;  %v1729_v53 = vsub.f32 %v56_v6, %v113_v24 }
  0x4a   :  { %1289 = vmatpush3.bf16.msra.mxu1 %v1288_v18  ;;  %v263_v33 = vsub.f32 %v1669_v5, %v2036_v34  ;;  %v270_v0 = vsub.f32 %v1680_v30, %v2038_v3  ;;  %v167_v47 = vand.u32 4294901760, %v74_v9  ;;  %v170_v29 = vand.u32 4294901760, %v75_v54 }
  0x4b   :  { %2073 = vst [vmem:[#allocation14_spill] sm:$0xff] %v1727_v52  ;;  %v1290_v36 = vpack.c.bf16 %v383_v13, %v376_v59  ;;  %1269 = vmatpush3.bf16.msra.mxu0 %v1727_v52  ;;  %v2042_v8 = vand.u32 4294901760, %v1684_v51  ;;  %v2043_v6 = vand.u32 4294901760, %v1693_v55  ;;  %v119_v24 = vand.u32 4294901760, %v58_v37 }
  0x4c   :  { %v1740_v19 = vsub.f32 %v57_v11, %v116_v57  ;;  %v264_v18 = vand.u32 4294901760, %v263_v33  ;;  %v271_v35 = vand.u32 4294901760, %v270_v0  ;;  %v1742_v34 = vpack.c.bf16 %v170_v29, %v167_v47 }
  0x4d   :  { %1291 = vmatprep.subr.bf16.mxu1 %v1290_v36  ;;  %v1744_v44 = vsub.f32 %v74_v9, %v167_v47  ;;  %v389_v59 = vsub.f32 %v1684_v51, %v2042_v8  ;;  %v396_v13 = vsub.f32 %v1693_v55, %v2043_v6  ;;  %v122_v3 = vand.u32 4294901760, %v59_v1  ;;  %v40_v9 = vld [vmem:[#allocation2] sm:$0xff] }
  0x4e   :  { %2074 = vst [vmem:[#allocation15_spill] sm:$0xff] %v1742_v34  ;;  %v1292_v52 = vpack.c.bf16 %v271_v35, %v264_v18  ;;  %1271 = vmatprep.subr.bf16.mxu0 %v1742_v34  ;;  %v1753_v11 = vsub.f32 %v75_v54, %v170_v29  ;;  %v2044_v57 = vand.u32 4294901760, %v1699_v61  ;;  %v2045_v36 = vand.u32 4294901760, %v1710_v56 }
  0x4f   :  { %v390_v33 = vand.u32 4294901760, %v389_v59  ;;  %v397_v0 = vand.u32 4294901760, %v396_v13  ;;  %v1757_v47 = vpack.c.bf16 %v122_v3, %v119_v24  ;;  %v1759_v8 = vsub.f32 %v58_v37, %v119_v24 }
  0x50   :  { %1293 = vmatpush3.bf16.msra.mxu1 %v1292_v52  ;;  %v277_v35 = vsub.f32 %v1699_v61, %v2044_v57  ;;  %v284_v54 = vsub.f32 %v1710_v56, %v2045_v36  ;;  %v1767_v29 = vand.u32 4294901760, %v41_v41  ;;  %v2048_v18 = vand.u32 4294901760, %v1714_v10 }
  0x51   :  { %2075 = vst [vmem:[#allocation16_spill] sm:$0xff] %v1757_v47  ;;  %v1294_v6 = vpack.c.bf16 %v397_v0, %v390_v33  ;;  %1273 = vmatpush3.bf16.msra.mxu0 %v1757_v47  ;;  %v2054_v59 = vand.u32 4294901760, %v1723_v2  ;;  %v1306_v52 = vpack.c.bf16 %v1584_v32, %v1582_v31  ;;  %v1774_v37 = vand.u32 4294901760, %v40_v9 }
  0x52   :  { %2076 = vst [vmem:[#allocation17_spill] sm:$0xff] %v1767_v29  ;;  %v278_v24 = vand.u32 4294901760, %v277_v35  ;;  %v285_v13 = vand.u32 4294901760, %v284_v54  ;;  %v1777_v57 = vsub.f32 %v41_v41, %v1767_v29  ;;  %v403_v36 = vsub.f32 %v1714_v10, %v2048_v18  ;;  %428 = vmatprep.mubr.f32.mxu1 %v1767_v29 }
  0x53   :  { %1295 = vmatprep.subr.bf16.mxu1 %v1294_v6  ;;  %v410_v33 = vsub.f32 %v1723_v2, %v2054_v59  ;;  %1307 = vmatprep.subr.bf16.mxu0 %v1306_v52  ;;  %v1787_v0 = vsub.f32 %v40_v9, %v1774_v37  ;;  %v2053_v35 = vand.u32 4294901760, %v1729_v53  ;;  %v2055_v41 = vand.u32 4294901760, %v1740_v19 }
  0x54   :  { %v1791_v54 = vsub.f32 %v59_v1, %v122_v3  ;;  %v1296_v47 = vpack.c.bf16 %v285_v13, %v278_v24  ;;  %v2056_v18 = vand.u32 4294901760, %v1777_v57  ;;  %v404_v34 = vand.u32 4294901760, %v403_v36 }
  0x55   :  { %2077 = vst [vmem:[#allocation18_spill] sm:$0xff] %v1787_v0  ;;  %v411_v29 = vand.u32 4294901760, %v410_v33  ;;  %v2061_v6 = vand.u32 4294901760, %v1787_v0  ;;  %v291_v52 = vsub.f32 %v1729_v53, %v2053_v35  ;;  %v298_v9 = vsub.f32 %v1740_v19, %v2055_v41 }
  0x56   :  { %1297 = vmatpush3.bf16.msra.mxu1 %v1296_v47  ;;  %v175_v1 = vsub.f32 %v1777_v57, %v2056_v18  ;;  %v1308_v3 = vpack.c.bf16 %v1568_v21, %v1564_v15  ;;  %v2062_v36 = vand.u32 4294901760, %v1744_v44  ;;  %v2063_v24 = vand.u32 4294901760, %v1753_v11 }
  0x57   :  { %v1298_v13 = vpack.c.bf16 %v411_v29, %v404_v34  ;;  %v181_v33 = vsub.f32 %v1787_v0, %v2061_v6  ;;  %v292_v35 = vand.u32 4294901760, %v291_v52  ;;  %v299_v59 = vand.u32 4294901760, %v298_v9 }
  0x58   :  { %v176_v41 = vand.u32 4294901760, %v175_v1  ;;  %v417_v47 = vsub.f32 %v1744_v44, %v2062_v36  ;;  %v424_v18 = vsub.f32 %v1753_v11, %v2063_v24  ;;  %v2065_v7 = vand.u32 4294901760, %v1759_v8 }
  0x59   :  { %1299 = vmatprep.subr.bf16.mxu1 %v1298_v13  ;;  %v182_v34 = vand.u32 4294901760, %v181_v33  ;;  %v1300_v29 = vpack.c.bf16 %v299_v59, %v292_v35  ;;  %v1310_v6 = vpack.c.bf16 %v1575_v26, %v1573_v25  ;;  %v2064_v52 = vand.u32 4294901760, %v1791_v54  ;;  %v42_v59 = vld [vmem:[#allocation2 + $0x10] sm:$0xff] }
  0x5a   :  { %177 = vmatprep.mubr.f32.mxu0 %v176_v41  ;;  %v418_v9 = vand.u32 4294901760, %v417_v47  ;;  %v425_v1 = vand.u32 4294901760, %v424_v18  ;;  %v305_v36 = vsub.f32 %v1759_v8, %v2065_v7  ;;  %v1827_v33 = vand.u32 4294901760, %v43_v23 }
  0x5b   :  { %183 = vmatmul.mubr.f32.vlgmr.msra.gmra.mrb[0].mxu0 %v182_v34  ;;  %1301 = vmatpush3.bf16.msra.mxu1 %v1300_v29  ;;  %v312_v13 = vsub.f32 %v1791_v54, %v2064_v52  ;;  %v1312_v41 = vpack.c.bf16 %v1589_v38, %v1579_v28  ;;  %v1314_v47 = vpack.c.bf16 %v1596_v43, %v1593_v40  ;;  %v1836_v29 = vand.u32 4294901760, %v42_v59 }
  0x5c   :  { %1309 = vmatpush3.bf16.msra.mxu0 %v1308_v3  ;;  %v1302_v35 = vpack.c.bf16 %v425_v1, %v418_v9  ;;  %v306_v24 = vand.u32 4294901760, %v305_v36  ;;  %v1834_v34 = vsub.f32 %v43_v23, %v1827_v33  ;;  %v1316_v3 = vpack.c.bf16 %v1619_v58, %v1601_v46 }
  0x5d   :  { %1311 = vmatprep.subr.bf16.mxu0 %v1310_v6  ;;  %v313_v18 = vand.u32 4294901760, %v312_v13  ;;  %v1318_v36 = vpack.c.bf16 %v1635_v12, %v1623_v63  ;;  %v2078_v9 = vand.u32 4294901760, %v1582_v31  ;;  %v2079_v6 = vand.u32 4294901760, %v1584_v32 }
  0x5e   :  { %1303 = vmatprep.subr.bf16.mxu1 %v1302_v35  ;;  %v189_v13 = vand.u32 4294901760, %v1834_v34  ;;  %v1848_v23 = vsub.f32 %v42_v59, %v1836_v29  ;;  %v2080_v35 = vand.u32 4294901760, %v1564_v15  ;;  %v2082_v7 = vand.u32 4294901760, %v1573_v25 }
  0x5f   :  { %v1304_v52 = vpack.c.bf16 %v313_v18, %v306_v24  ;;  %v1370_v1 = vpack.c.bf16 %v2079_v6, %v2078_v9  ;;  %v2081_v24 = vand.u32 4294901760, %v1568_v21  ;;  %v2083_v0 = vand.u32 4294901760, %v1575_v26 }
  0x60   :  { %1313 = vmatpush3.bf16.msra.mxu0 %v1312_v41  ;;  %v2084_v31 = vand.u32 4294901760, %v1579_v28  ;;  %v2085_v32 = vand.u32 4294901760, %v1589_v38  ;;  %v2086_v59 = vand.u32 4294901760, %v1593_v40  ;;  %v2087_v9 = vand.u32 4294901760, %v1596_v43 }
  0x61   :  { %v1372_v18 = vpack.c.bf16 %v2081_v24, %v2080_v35  ;;  %v1374_v48 = vpack.c.bf16 %v2083_v0, %v2082_v7  ;;  %1305 = vmatpush3.bf16.msra.mxu1 %v1304_v52  ;;  %1315 = vmatprep.subr.bf16.mxu0 %v1314_v47  ;;  %v2088_v21 = vand.u32 4294901760, %v1601_v46  ;;  %v2089_v6 = vand.u32 4294901760, %v1619_v58 }
  0x62   :  { %v1376_v41 = vpack.c.bf16 %v2085_v32, %v2084_v31  ;;  %v1378_v15 = vpack.c.bf16 %v2087_v9, %v2086_v59  ;;  %1339 = vmatprep.subr.bf16.mxu1 %v1562_v14  ;;  %v190_v26 = vsub.f32 %v1834_v34, %v189_v13  ;;  %v195_v28 = vand.u32 4294901760, %v1848_v23 }
  0x63   :  { %v1870_v25 = vpack.c.bf16 %v2089_v6, %v2088_v21  ;;  %v2090_v38 = vand.u32 4294901760, %v1623_v63  ;;  %v2091_v40 = vand.u32 4294901760, %v1635_v12  ;;  %v2092_v7 = vand.u32 4294901760, %v1639_v17  ;;  %v2100_v21 = vld [vmem:[#allocation12_spill] sm:$0xff]  ;;  %v2101_v6 = vld [vmem:[#allocation13_spill] sm:$0xff] }
  0x64   :  { %v2093_v46 = vand.u32 4294901760, %v1650_v42  ;;  %v2094_v0 = vand.u32 4294901760, %v1654_v50  ;;  %v2095_v52 = vand.u32 4294901760, %v1663_v60  ;;  %v2096_v35 = vand.u32 4294901760, %v1669_v5  ;;  %430 = vmatmul.mubr.f32.vlgmr.msra.gmra.mrb[0].mxu1 %v1774_v37  ;;  %1317 = vmatpush3.bf16.msra.mxu0 %v1316_v3 }
  0x65   :  { %v1382_v43 = vpack.c.bf16 %v2091_v40, %v2090_v38  ;;  %v2097_v24 = vand.u32 4294901760, %v1680_v30  ;;  %v1320_v12 = vpack.c.bf16 %v1650_v42, %v1639_v17  ;;  %v191_v31 = vand.u32 4294901760, %v190_v26  ;;  %1341 = vmatpush3.bf16.msra.mxu1 %v1566_v20  ;;  %1319 = vmatprep.subr.bf16.mxu0 %v1318_v36  ;;  %v2099_v36 = vld [vmem:[#allocation11_spill] sm:$0xff]  ;;  %v2102_v26 = vld [vmem:[#allocation18_spill] sm:$0xff] }
  0x66   :  { %v1885_v58 = vpack.c.bf16 %v2093_v46, %v2092_v7  ;;  %v1891_v47 = vpack.c.bf16 %v2095_v52, %v2094_v0  ;;  %v196_v32 = vsub.f32 %v1848_v23, %v195_v28  ;;  %v1322_v59 = vpack.c.bf16 %v1663_v60, %v1654_v50  ;;  %1343 = vmatprep.subr.bf16.mxu1 %v1570_v22  ;;  %v2103_v38 = vld [vmem:[#allocation14_spill] sm:$0xff]  ;;  %v2104_v40 = vld [vmem:[#allocation15_spill] sm:$0xff]  ;;  %v2105_v7 = vld [vmem:[#allocation17_spill] sm:$0xff] }
  0x67   :  { %v1897_v63 = vpack.c.bf16 %v2097_v24, %v2096_v35  ;;  %192 = vmatprep.mubr.f32.mxu0 %v191_v31  ;;  %435 = vmatprep.mubr.f32.mxu1 %v1827_v33  ;;  %v1324_v17 = vpack.c.bf16 %v1680_v30, %v1669_v5  ;;  %v1326_v42 = vpack.c.bf16 %v1693_v55, %v1684_v51  ;;  %v2098_v50 = vand.u32 4294901760, %v1777_v57  ;;  %v2106_v46 = vld [vmem:[#allocation16_spill] sm:$0xff] }
  0x68   :  { %v197_v9 = vand.u32 4294901760, %v196_v32  ;;  %1321 = vmatpush3.bf16.msra.mxu0 %v1320_v12  ;;  %437 = vmatmul.mubr.f32.gmra.mrb[2].mxu1 %v1836_v29  ;;  %v1328_v60 = vpack.c.bf16 %v1710_v56, %v1699_v61  ;;  %v1330_v5 = vpack.c.bf16 %v1723_v2, %v1714_v10  ;;  %v1332_v30 = vpack.c.bf16 %v1740_v19, %v1729_v53 }
  0x69   :  { %1345 = vmatpush3.bf16.msra.mxu1 %v1577_v27  ;;  %1323 = vmatprep.subr.bf16.mxu0 %v1322_v59  ;;  %v1336_v3 = vpack.c.bf16 %v1791_v54, %v1759_v8 }
  0x6a   :  { %1347 = vmatprep.subr.bf16.mxu1 %v1591_v39  ;;  %198 = vmatmul.mubr.f32.gmra.mrb[2].mxu0 %v197_v9 }
  0x6b   :  { %572 = vmatprep.mubr.f32.mxu0 %v1777_v57  ;;  %688 = vmatprep.mubr.f32.mxu1 %v2098_v50  ;;  %v1334_v57 = vpack.c.bf16 %v1753_v11, %v1744_v44 }
  0x6c   :  { %1325 = vmatpush3.bf16.msra.mxu0 %v1324_v17 }
  0x6d   :  { %1349 = vmatpush3.bf16.msra.mxu1 %v1599_v45  ;;  %1327 = vmatprep.subr.bf16.mxu0 %v1326_v42 }
  0x6e   :  { %1351 = vmatprep.subr.bf16.mxu1 %v1621_v62 }
  0x70   :  { %1329 = vmatpush3.bf16.msra.mxu0 %v1328_v60 }
  0x71   :  { %1353 = vmatpush3.bf16.msra.mxu1 %v1637_v16  ;;  %1331 = vmatprep.subr.bf16.mxu0 %v1330_v5 }
  0x72   :  { %1355 = vmatprep.subr.bf16.mxu1 %v1652_v49 }
  0x74   :  { %1333 = vmatpush3.bf16.msra.mxu0 %v1332_v30 }
  0x75   :  { %1357 = vmatpush3.bf16.msra.mxu1 %v1667_v4  ;;  %1335 = vmatprep.subr.bf16.mxu0 %v1334_v57 }
  0x76   :  { %1359 = vmatprep.subr.bf16.mxu1 %v2099_v36 }
  0x78   :  { %1337 = vmatpush3.bf16.msra.mxu0 %v1336_v3 }
  0x79   :  { %1361 = vmatpush3.bf16.msra.mxu1 %v2100_v21  ;;  %1371 = vmatprep.subr.bf16.mxu0 %v1370_v1  ;;  %v2107_v1 = vand.u32 4294901760, %v2102_v26 }
  0x7a   :  { %1363 = vmatprep.subr.bf16.mxu1 %v2101_v6 }
  0x7b   :  { %575 = vmatmul.mubr.f32.vlgmr.msra.gmra.mrb[4].mxu0 %v2102_v26 }
  0x7c   :  { %1373 = vmatpush3.bf16.msra.mxu0 %v1372_v18  ;;  %581 = vmatprep.mubr.f32.mxu0 %v1834_v34  ;;  %v2111_v34 = vand.u32 4294901760, %v1710_v56 }
  0x7d   :  { %1365 = vmatpush3.bf16.msra.mxu1 %v2103_v38  ;;  %1375 = vmatprep.subr.bf16.mxu0 %v1374_v48  ;;  %v2109_v48 = vand.u32 4294901760, %v1693_v55 }
  0x7e   :  { %1367 = vmatprep.subr.bf16.mxu1 %v2104_v40 }
  0x7f   :  { %584 = vmatmul.mubr.f32.gmra.mrb[6].mxu0 %v1848_v23  ;;  %v2115_v23 = vand.u32 4294901760, %v1740_v19 }
  0x80   :  { %1377 = vmatpush3.bf16.msra.mxu0 %v1376_v41  ;;  %869 = vmatprep.mubr.f32.mxu0 %v2105_v7 }
  0x81   :  { %1369 = vmatpush3.bf16.msra.mxu1 %v2106_v46  ;;  %1379 = vmatprep.subr.bf16.mxu0 %v1378_v15 }
  0x82   :  { %1403 = vmatprep.subr.bf16.mxu1 %v1562_v14  ;;  %v2108_v14 = vand.u32 4294901760, %v1684_v51  ;;  %v2113_v51 = vand.u32 4294901760, %v1723_v2 }
  0x84   :  { %692 = vmatmul.mubr.f32.vlgmr.msra.gmra.mrb[4].mxu1 %v2107_v1  ;;  %1381 = vmatpush3.bf16.msra.mxu0 %v1870_v25 }
  0x85   :  { %1405 = vmatpush3.bf16.msra.mxu1 %v1566_v20  ;;  %699 = vmatprep.mubr.f32.mxu1 %v189_v13  ;;  %v1390_v20 = vpack.c.bf16 %v2109_v48, %v2108_v14 }
  0x86   :  { %1383 = vmatprep.subr.bf16.mxu0 %v1382_v43  ;;  %1407 = vmatprep.subr.bf16.mxu1 %v1570_v22  ;;  %v2110_v22 = vand.u32 4294901760, %v1699_v61  ;;  %v2116_v61 = vand.u32 4294901760, %v1744_v44 }
  0x88   :  { %703 = vmatmul.mubr.f32.gmra.mrb[6].mxu1 %v195_v28  ;;  %1385 = vmatpush3.bf16.msra.mxu0 %v1885_v58  ;;  %v1392_v13 = vpack.c.bf16 %v2111_v34, %v2110_v22 }
  0x89   :  { %1409 = vmatpush3.bf16.msra.mxu1 %v1577_v27  ;;  %1387 = vmatprep.subr.bf16.mxu0 %v1891_v47  ;;  %v2112_v27 = vand.u32 4294901760, %v1714_v10  ;;  %v2118_v10 = vand.u32 4294901760, %v1759_v8 }
  0x8a   :  { %1411 = vmatprep.subr.bf16.mxu1 %v1591_v39  ;;  %980 = vmatprep.mubr.f32.mxu1 %v2105_v7  ;;  %v2114_v39 = vand.u32 4294901760, %v1729_v53 }
  0x8b   :  { %v1394_v55 = vpack.c.bf16 %v2113_v51, %v2112_v27 }
  0x8c   :  { %1389 = vmatpush3.bf16.msra.mxu0 %v1897_v63  ;;  %v1396_v18 = vpack.c.bf16 %v2115_v23, %v2114_v39 }
  0x8d   :  { %1413 = vmatpush3.bf16.msra.mxu1 %v1599_v45  ;;  %1391 = vmatprep.subr.bf16.mxu0 %v1390_v20  ;;  %v2117_v45 = vand.u32 4294901760, %v1753_v11 }
  0x8e   :  { %1415 = vmatprep.subr.bf16.mxu1 %v1621_v62  ;;  %v2119_v62 = vand.u32 4294901760, %v1791_v54 }
  0x8f   :  { %v1398_v56 = vpack.c.bf16 %v2117_v45, %v2116_v61 }
  0x90   :  { %1393 = vmatpush3.bf16.msra.mxu0 %v1392_v13  ;;  %v1400_v2 = vpack.c.bf16 %v2119_v62, %v2118_v10 }
  0x91   :  { %1417 = vmatpush3.bf16.msra.mxu1 %v1637_v16  ;;  %1395 = vmatprep.subr.bf16.mxu0 %v1394_v55 }
  0x92   :  { %1419 = vmatprep.subr.bf16.mxu1 %v1652_v49 }
  0x94   :  { %1397 = vmatpush3.bf16.msra.mxu0 %v1396_v18 }
  0x95   :  { %1421 = vmatpush3.bf16.msra.mxu1 %v1667_v4  ;;  %1399 = vmatprep.subr.bf16.mxu0 %v1398_v56 }
  0x96   :  { %1423 = vmatprep.subr.bf16.mxu1 %v2099_v36 }
  0x98   :  { %1401 = vmatpush3.bf16.msra.mxu0 %v1400_v2 }
  0x99   :  { %1425 = vmatpush3.bf16.msra.mxu1 %v2100_v21 }
  0x9a   :  { %1427 = vmatprep.subr.bf16.mxu1 %v2101_v6 }
  0x9b   :  { %871 = vmatmul.mubr.f32.vlgmr.msra.gmra.mrb[8].mxu0 %v1774_v37 }
  0x9c   :  { %876 = vmatprep.mubr.f32.mxu0 %v1827_v33 }
  0x9d   :  { %1429 = vmatpush3.bf16.msra.mxu1 %v2103_v38 }
  0x9e   :  { %1431 = vmatprep.subr.bf16.mxu1 %v2104_v40 }
  0x9f   :  { %878 = vmatmul.mubr.f32.gmra.mrb[10].mxu0 %v1836_v29 }
  0xa1   :  { %1433 = vmatpush3.bf16.msra.mxu1 %v2106_v46 }
  0xa4   :  { %982 = vmatmul.mubr.f32.vlgmr.msra.gmra.mrb[8].mxu1 %v1774_v37 }
  0xa5   :  { %987 = vmatprep.mubr.f32.mxu1 %v1827_v33 }
  0xa8   :  { %989 = vmatmul.mubr.f32.gmra.mrb[10].mxu1 %v1836_v29 }
 0x12e   :  { %v1046_v44 = vpop.f32.mrb[0].mxu0 }
 0x12f   :  { %v1047_v53 = vpop.f32.mrb[1].mxu0 }
 0x130   :  { %v1048_v16 = vadd.f32 %v1047_v53, %v1046_v44 }
 0x137   :  { %v1084_v49 = vpop.f32.mrb[0].mxu1 }
 0x138   :  { %v1085_v4 = vpop.f32.mrb[1].mxu1 }
 0x139   :  { %v1086_v8 = vadd.f32 %v1085_v4, %v1084_v49 }
 0x13b   :  { %v432_v19 = vadd.f32 %v1086_v8, %v1048_v16  ;;  %v1087_v11 = vpop.f32.mrb[2].mxu1 }
 0x13c   :  { %v1088_v54 = vpop.f32.mrb[3].mxu1 }
 0x13d   :  { %v1049_v41 = vpop.f32.mrb[2].mxu0  ;;  %v1089_v15 = vadd.f32 %v1088_v54, %v1087_v11 }
 0x13e   :  { %v1050_v25 = vpop.f32.mrb[3].mxu0 }
 0x13f   :  { %v1051_v28 = vadd.f32 %v1050_v25, %v1049_v41 }
 0x141   :  { %v439_v43 = vadd.f32 %v1089_v15, %v1051_v28 }
 0x14e   :  { %v1122_v58 = vpop.f32.mrb[4].mxu0 }
 0x14f   :  { %v1123_v37 = vpop.f32.mrb[5].mxu0 }
 0x150   :  { %v1124_v0 = vadd.f32 %v1123_v37, %v1122_v58 }
 0x152   :  { %v577_v33 = vadd.f32 %v1124_v0, %v432_v19  ;;  %v1125_v52 = vpop.f32.mrb[6].mxu0 }
 0x153   :  { %v1126_v29 = vpop.f32.mrb[7].mxu0 }
 0x154   :  { %v1127_v47 = vadd.f32 %v1126_v29, %v1125_v52 }
 0x156   :  { %v586_v35 = vadd.f32 %v1127_v47, %v439_v43 }
 0x157   :  { %v1160_v24 = vpop.f32.mrb[4].mxu1 }
 0x158   :  { %v1161_v63 = vpop.f32.mrb[5].mxu1 }
 0x159   :  { %v1162_v12 = vadd.f32 %v1161_v63, %v1160_v24 }
 0x15b   :  { %v694_v31 = vadd.f32 %v1162_v12, %v577_v33  ;;  %v1163_v32 = vpop.f32.mrb[6].mxu1 }
 0x15c   :  { %v1164_v59 = vpop.f32.mrb[7].mxu1 }
 0x15d   :  { %v1165_v9 = vadd.f32 %v1164_v59, %v1163_v32 }
 0x15f   :  { %v705_v17 = vadd.f32 %v1165_v9, %v586_v35 }
 0x16e   :  { %v1198_v42 = vpop.f32.mrb[8].mxu0 }
 0x16f   :  { %v1199_v50 = vpop.f32.mrb[9].mxu0 }
 0x170   :  { %v1200_v60 = vadd.f32 %v1199_v50, %v1198_v42 }
 0x172   :  { %v873_v5 = vadd.f32 %v1200_v60, %v694_v31  ;;  %v1201_v30 = vpop.f32.mrb[10].mxu0 }
 0x173   :  { %v1202_v57 = vpop.f32.mrb[11].mxu0 }
 0x174   :  { %v1203_v3 = vadd.f32 %v1202_v57, %v1201_v30 }
 0x176   :  { %v880_v36 = vadd.f32 %v1203_v3, %v705_v17 }
 0x177   :  { %v1236_v21 = vpop.f32.mrb[8].mxu1 }
 0x178   :  { %v1237_v6 = vpop.f32.mrb[9].mxu1 }
 0x179   :  { %v1238_v26 = vadd.f32 %v1237_v6, %v1236_v21 }
 0x17b   :  { %v984_v38 = vadd.f32 %v1238_v26, %v873_v5  ;;  %v1239_v40 = vpop.f32.mrb[10].mxu1 }
 0x17c   :  { %v1240_v7 = vpop.f32.mrb[11].mxu1 }
 0x17d   :  { %994 = vst [vmem:[#allocation7] sm:$0xff] %v984_v38  ;;  %v1241_v46 = vadd.f32 %v1240_v7, %v1239_v40 }
 0x17f   :  { %v991_v1 = vadd.f32 %v1241_v46, %v880_v36 }
 0x181   :  { %995 = vst [vmem:[#allocation7 + $0x8] sm:$0xff] %v991_v1 }
 0x182   :  { %1496 = shalt.err (!%p1493_p6)
}
 0x183   :  { %s1497_s12 = scalar_lea.hbm %s2019_s2, 256 }
 0x184   :  { %p1498_p7 = scmp.ne.s32.totalorder %s2019_s2, %s1497_s12  ;;  %p1501_p8 = scmp.lt.u32.totalorder %s1497_s12, %s2019_s2 }
 0x186   :  { %p1503_p9 = pnand %p1501_p8, %p1498_p7 }
 0x188   :  { %1506 = shalt.err (!%p1503_p9)
}
 0x189   :  { %1007 = dma.vmem_to_hbm [thread:$0]  %s1002_s8, 256, %s2019_s2, [#allocation4], %s1517_s0, %s1517_s0, %s1518_s5  }
 0x18a   :  { %1511 = dma.done.wait [#allocation4], 256  }
 0x18b   :  { %1512 = vsyncadd [#allocation4], 4294967040 }
 0x18c   :  { %1011 = vsyncpa [#allocation3], 1 }
 0x18d   :  { %1012 = vsyncpa [#allocation6], 1 }
 0x18e   :  { %1013 = vsyncpa [#allocation4], 1 }

</bundles_post_ra>
